<compile_context>
chip_gen: v7x
topology: tpu7x:2x2x1
jax: 0.10.0
libtpu: 0.0.40
codegen_flags: <defaults>
</compile_context>

<pallas_src>
import jax
import jax.numpy as jnp
from jax.experimental import pallas as pl
from jax.experimental.pallas import tpu as pltpu


def _i3d_head_kernel(x_ref, w_ref, b_ref, o_ref, acc_ref):
    # x_ref:   (t_n, t_c, S)   contiguous slice of the (N, C, S) activation view
    # w_ref:   (t_c, Kpad)     fc weight^T tile, pre-scaled by 1/S (folds avg pool)
    # b_ref:   (1, Kpad)       fc bias, zero-padded to Kpad
    # o_ref:   (t_n, Kpad)     classification scores (lane-dense slab)
    # acc_ref: (t_n, Kpad)     f32 scratch: bias + sum of partial matmuls over C
    j = pl.program_id(1)

    @pl.when(j == 0)
    def _():
        acc_ref[...] = jnp.broadcast_to(b_ref[...], acc_ref.shape).astype(jnp.float32)

    # Pool this channel tile over the full spatial extent (f32 accumulation; the
    # 1/S scale lives in w_ref), then fold it into the logits accumulator.
    pooled = jnp.sum(x_ref[...].astype(jnp.float32), axis=-1)          # (t_n, t_c)
    acc_ref[...] += jnp.dot(pooled, w_ref[...],
                            preferred_element_type=jnp.float32)

    @pl.when(j == pl.num_programs(1) - 1)
    def _():
        o_ref[...] = acc_ref[...].astype(o_ref.dtype)


def _device_vmem_limit_bytes():
    """Scoped-VMEM limit with headroom for Mosaic internals:
    64 MiB phys (v7x) -> 48 MiB ; 128 MiB phys (v5e/v6e) -> 96 MiB."""
    default_cap = 64 * 1024 * 1024
    try:
        cap = int(pltpu.get_tpu_info().vmem_capacity_bytes)
    except Exception:
        cap = default_cap
    if not cap or cap < (16 << 20):
        cap = default_cap
    return (cap // 4) * 3


def _largest_div8(n, cap):
    """Largest multiple of 8 that divides n and is <= cap (assumes n % 8 == 0)."""
    best = 8
    t = 8
    while t <= cap:
        if n % t == 0:
            best = t
        t += 8
    return best


def _pick_tn(n, max_tn=64):
    """Batch tile: multiple of 8 dividing N (or N itself), capped so the
    parallel grid axis has >= 2 steps when N allows (v7x megacore)."""
    if n % 8 != 0:
        return n
    cap = min(max_tn, n)
    if n >= 16:
        cap = min(cap, n // 2)
    return _largest_div8(n, max(8, cap))


def _pick_tc(c, t_n, s, k_pad, itemsize, budget):
    """Largest channel tile (multiple of 8 dividing C, or full C) whose
    double-buffered x/w blocks plus fixed blocks fit the tile budget."""
    if c % 8 != 0:
        return c
    fixed = 3 * t_n * k_pad * 4 + 2 * k_pad * 4        # out (x2) + acc + bias (x2)
    per_c = 2 * t_n * s * itemsize + 2 * k_pad * 4     # x tile (x2) + w tile (x2)
    avail = max(0, budget - fixed)
    cap = max(8, (avail // per_c) // 8 * 8)
    return _largest_div8(c, min(c, cap))


def prepare_i3d_head_params(weight, bias, pool_size):
    """weight: (K, C) PyTorch layout; bias: (K,). Folds the 1/S avg-pool scale
    into the transposed weight and zero-pads K to a lane-dense multiple of 128.
    Call once at model init (hoisted out of the per-call forward)."""
    k = weight.shape[0]
    k_pad = max(128, ((k + 127) // 128) * 128)
    w_t = jnp.transpose(weight, (1, 0)).astype(jnp.float32) / jnp.float32(pool_size)
    w_t = jnp.pad(w_t, ((0, 0), (0, k_pad - k)))                       # (C, Kpad)
    b_2d = jnp.pad(bias.astype(jnp.float32).reshape(1, k),
                   ((0, 0), (0, k_pad - k)))                           # (1, Kpad)
    return w_t, b_2d, k


def i3d_head_forward(x_ncthw, w_t_pad, b_pad, num_classes, *, tile_budget_bytes=None):
    """x_ncthw: (N, C, T, H, W); w_t_pad/b_pad from prepare_i3d_head_params."""
    n, c, t, h, w = x_ncthw.shape
    s = t * h * w
    k_pad = w_t_pad.shape[1]

    # Contiguous view — no HBM transpose.
    x_ncs = x_ncthw.reshape(n, c, s)
    itemsize = jnp.dtype(x_ncs.dtype).itemsize

    vmem_limit = _device_vmem_limit_bytes()
    if tile_budget_bytes is None:
        tile_budget_bytes = int(vmem_limit * 0.7)

    t_n = _pick_tn(n)
    t_c = _pick_tc(c, t_n, s, k_pad, itemsize, tile_budget_bytes)
    # If even the minimum channel tile blows the budget, shrink the batch tile.
    while (n % 8 == 0 and t_n > 8
           and 2 * t_n * t_c * s * itemsize > tile_budget_bytes):
        new_tn = _largest_div8(n, t_n - 8)
        if new_tn == t_n:
            break
        t_n = new_tn
        t_c = _pick_tc(c, t_n, s, k_pad, itemsize, tile_budget_bytes)

    grid = (n // t_n, c // t_c)

    cost = pl.CostEstimate(
        flops=n * c * s + 2 * n * c * k_pad,
        transcendentals=0,
        bytes_accessed=(n * c * s * itemsize
                        + (n // t_n) * c * k_pad * 4
                        + n * k_pad * 4),
    )

    out_pad = pl.pallas_call(
        _i3d_head_kernel,
        out_shape=jax.ShapeDtypeStruct((n, k_pad), jnp.float32),
        grid_spec=pltpu.PrefetchScalarGridSpec(
            num_scalar_prefetch=0,
            grid=grid,
            in_specs=[
                pl.BlockSpec((t_n, t_c, s), lambda i, j: (i, j, 0)),   # x: full S
                pl.BlockSpec((t_c, k_pad), lambda i, j: (j, 0)),       # weight tile
                pl.BlockSpec((1, k_pad), lambda i, j: (0, 0)),         # bias (resident)
            ],
            out_specs=pl.BlockSpec((t_n, k_pad), lambda i, j: (i, 0)),
            scratch_shapes=[pltpu.VMEM((t_n, k_pad), jnp.float32)],
        ),
        compiler_params=pltpu.CompilerParams(
            dimension_semantics=("parallel", "arbitrary"),
            vmem_limit_bytes=vmem_limit,
        ),
        cost_estimate=cost,
    )(x_ncs, w_t_pad, b_pad)

    return out_pad[:, :num_classes]


if __name__ == "__main__":
    # Small shapes consistent with the I3D head: x is (N, C, T, H, W).
    N, C, T, H, W = 2, 32, 4, 16, 16
    NUM_CLASSES = 16
    INIT_STD = 0.01

    key = jax.random.PRNGKey(0)
    kx, kw, kb = jax.random.split(key, 3)

    x = jax.random.normal(kx, (N, C, T, H, W), dtype=jnp.float32)
    # init_weights(): normal_(std=0.01) on all fc_cls parameters (weight & bias).
    fc_weight = INIT_STD * jax.random.normal(kw, (NUM_CLASSES, C), dtype=jnp.float32)
    fc_bias = INIT_STD * jax.random.normal(kb, (NUM_CLASSES,), dtype=jnp.float32)

    # Parameter transform (transpose, 1/S fold, Kpad padding) hoisted out of the
    # forward: done once, reused for every call.
    w_t_pad, b_pad, _ = prepare_i3d_head_params(fc_weight, fc_bias, T * H * W)

    # Reference in plain JAX (same math as the PyTorch module in eval mode).
    pooled_ref = jnp.mean(x, axis=(2, 3, 4))                 # (N, C)
    ref = pooled_ref @ fc_weight.T + fc_bias                 # (N, K)

    # 1) Tiny tile budget -> multiple C tiles; exercises init/accum/finalize.
    out_tiled = i3d_head_forward(x, w_t_pad, b_pad, NUM_CLASSES,
                                 tile_budget_bytes=96 * 1024)
    out_tiled = jax.block_until_ready(out_tiled)
    assert out_tiled.shape == (N, NUM_CLASSES)
    assert jnp.allclose(out_tiled, ref, atol=1e-4, rtol=1e-4)

    # 2) Default device-sized budget -> largest contiguous DMA blocks.
    out_default = jax.block_until_ready(
        i3d_head_forward(x, w_t_pad, b_pad, NUM_CLASSES))
    assert out_default.shape == (N, NUM_CLASSES)
    assert jnp.allclose(out_default, ref, atol=1e-4, rtol=1e-4)

    print("KERNEL_OK")
</pallas_src>

<mosaic_0001>
module attributes {stable_mosaic.version = 11 : i64} {
  func.func @_i3d_head_kernel(%arg0: i32, %arg1: i32, %arg2: memref<2x8x1024xf32, #tpu.memory_space<vmem>>, %arg3: memref<8x128xf32, #tpu.memory_space<vmem>>, %arg4: memref<1x128xf32, #tpu.memory_space<vmem>>, %arg5: memref<2x128xf32, #tpu.memory_space<vmem>>, %arg6: memref<2x128xf32, #tpu.memory_space<vmem>>) attributes {dimension_semantics = [#tpu.dimension_semantics<parallel>, #tpu.dimension_semantics<arbitrary>], iteration_bounds = array<i64: 1, 4>, scalar_prefetch = 0 : i64, scratch_operands = 1 : i64, tpu.core_type = #tpu.core_type<tc>, window_params = [{transform_indices = @transform_0, window_bounds = array<i64: 2, 8, 1024>}, {transform_indices = @transform_1, window_bounds = array<i64: 8, 128>}, {pipeline_mode = #tpu.pipeline_mode<synchronous>, transform_indices = @transform_2, window_bounds = array<i64: 1, 128>}, {transform_indices = @transform_3, window_bounds = array<i64: 2, 128>}]} {
    %c0_i32 = arith.constant 0 : i32
    %0 = arith.cmpi eq, %arg1, %c0_i32 : i32
    %1 = arith.extui %0 : i1 to i32
    %c0_i32_0 = arith.constant 0 : i32
    %2 = arith.cmpi ne, %1, %c0_i32_0 : i32
    scf.if %2 {
      %c0_11 = arith.constant 0 : index
      %c0_12 = arith.constant 0 : index
      %13 = vector.load %arg4[%c0_11, %c0_12] : memref<1x128xf32, #tpu.memory_space<vmem>>, vector<1x128xf32>
      %14 = vector.shape_cast %13 : vector<1x128xf32> to vector<1x128xf32>
      %15 = vector.broadcast %14 : vector<1x128xf32> to vector<2x128xf32>
      %c0_13 = arith.constant 0 : index
      %c0_14 = arith.constant 0 : index
      %16 = vector.load %arg6[%c0_13, %c0_14] : memref<2x128xf32, #tpu.memory_space<vmem>>, vector<2x128xf32>
      tpu.vector_store %arg6[%c0_13, %c0_14], %15 {strides = array<i32>} : memref<2x128xf32, #tpu.memory_space<vmem>>, vector<2x128xf32>,
    } else {
    }
    %c0 = arith.constant 0 : index
    %c0_1 = arith.constant 0 : index
    %c0_2 = arith.constant 0 : index
    %3 = vector.load %arg2[%c0, %c0_1, %c0_2] : memref<2x8x1024xf32, #tpu.memory_space<vmem>>, vector<2x8x1024xf32>
    %cst = arith.constant dense<0.000000e+00> : vector<2x8xf32>
    %4 = vector.multi_reduction <add>, %3, %cst [2] : vector<2x8x1024xf32> to vector<2x8xf32>
    %c0_3 = arith.constant 0 : index
    %c0_4 = arith.constant 0 : index
    %5 = vector.load %arg6[%c0_3, %c0_4] : memref<2x128xf32, #tpu.memory_space<vmem>>, vector<2x128xf32>
    %c0_5 = arith.constant 0 : index
    %c0_6 = arith.constant 0 : index
    %6 = vector.load %arg3[%c0_5, %c0_6] : memref<8x128xf32, #tpu.memory_space<vmem>>, vector<8x128xf32>
    %cst_7 = arith.constant dense<0.000000e+00> : vector<2x128xf32>
    %7 = tpu.matmul %4, %6, %cst_7 {dimension_numbers = #tpu.dot_dimension_numbers<[1], [0], [0], [1], [0, 0, 1, 1], [], []>} : vector<2x8xf32>, vector<8x128xf32>, vector<2x128xf32> -> vector<2x128xf32>
    %8 = arith.addf %5, %7 : vector<2x128xf32>
    %c0_8 = arith.constant 0 : index
    %c0_9 = arith.constant 0 : index
    %9 = vector.load %arg6[%c0_8, %c0_9] : memref<2x128xf32, #tpu.memory_space<vmem>>, vector<2x128xf32>
    tpu.vector_store %arg6[%c0_8, %c0_9], %8 {strides = array<i32>} : memref<2x128xf32, #tpu.memory_space<vmem>>, vector<2x128xf32>,
    %c3_i32 = arith.constant 3 : i32
    %10 = arith.cmpi eq, %arg1, %c3_i32 : i32
    %11 = arith.extui %10 : i1 to i32
    %c0_i32_10 = arith.constant 0 : i32
    %12 = arith.cmpi ne, %11, %c0_i32_10 : i32
    scf.if %12 {
      %c0_11 = arith.constant 0 : index
      %c0_12 = arith.constant 0 : index
      %13 = vector.load %arg6[%c0_11, %c0_12] : memref<2x128xf32, #tpu.memory_space<vmem>>, vector<2x128xf32>
      %c0_13 = arith.constant 0 : index
      %c0_14 = arith.constant 0 : index
      %14 = vector.load %arg5[%c0_13, %c0_14] : memref<2x128xf32, #tpu.memory_space<vmem>>, vector<2x128xf32>
      tpu.vector_store %arg5[%c0_13, %c0_14], %13 {strides = array<i32>} : memref<2x128xf32, #tpu.memory_space<vmem>>, vector<2x128xf32>,
    } else {
    }
    return
  }
  func.func @transform_0(%arg0: i32, %arg1: i32) -> (i32, i32, i32) {
    %c0_i32 = arith.constant 0 : i32
    %c0_i32_0 = arith.constant 0 : i32
    return %arg0, %arg1, %c0_i32 : i32, i32, i32
  }
  func.func @transform_1(%arg0: i32, %arg1: i32) -> (i32, i32) {
    %c0_i32 = arith.constant 0 : i32
    %c0_i32_0 = arith.constant 0 : i32
    return %arg1, %c0_i32 : i32, i32
  }
  func.func @transform_2(%arg0: i32, %arg1: i32) -> (i32, i32) {
    %c0_i32 = arith.constant 0 : i32
    %c0_i32_0 = arith.constant 0 : i32
    %c0_i32_1 = arith.constant 0 : i32
    return %c0_i32, %c0_i32_0 : i32, i32
  }
  func.func @transform_3(%arg0: i32, %arg1: i32) -> (i32, i32) {
    %c0_i32 = arith.constant 0 : i32
    %c0_i32_0 = arith.constant 0 : i32
    return %arg0, %c0_i32 : i32, i32
  }
}

</mosaic_0001>

<bundles_post_ra>
// kernel: tpu_custom_call.1
= control target key start
LH: loop header
LB: loop body
LE: loop exit
PB: predicated region body
PF: predicated region fallthrough
CT: control target
= control target key end

     0   :  { %8 = vsyncpa [#allocation4], 0  ;;  %s966_s0 = inlined_call_operand.hbm [shape: f32[2,32,1024], index: 0, kind: input, shape index: {}]   ;;  %s967_s1 = inlined_call_operand.hbm [shape: f32[32,128], index: 1, kind: input, shape index: {}]   ;;  %s968_s2 = inlined_call_operand.vmem [shape: f32[1,128], index: 2, kind: input, shape index: {}]   ;;  %s969_s3 = inlined_call_operand.hbm [shape: f32[2,128], index: 3, kind: output, shape index: {}]  }
   0x1   :  { %10 = vsyncpa [#allocation4 + $0x1], 0 }
   0x2   :  { %11 = vsyncpa [#allocation7], 0 }
   0x3   :  { %13 = vsyncpa [#allocation7 + $0x1], 0 }
   0x4   :  { %14 = vsyncpa [#allocation5], 0  ;;  %s749_s12 = smov 0   ;;  %s751_s13 = smov 0  }
   0x5   :  { %s753_s14 = smov 0   ;;  %s755_s15 = smov 0  }
   0x6   :  { %s757_s16 = smov 0   ;;  %s759_s17 = smov 0  }
   0x7 LB: > { %s476_s18 = sadd.s32 4294967295, %s719_s17   ;;  %s29_s19 = sadd.s32 1, %s715_s16  ;;  %s719_s17 = sphi %s759_s17, %s20_s17   ;;  %s715_s16 = sphi %s757_s16, %s983_s16   ;;  %s711_s15 = sphi %s755_s15, %s982_s15   ;;  %s707_s14 = sphi %s753_s14, %s981_s14   ;;  %s703_s13 = sphi %s751_s13, %s980_s13   ;;  %s699_s12 = sphi %s749_s12, %s979_s12  }
   0x8   : > { %p30_p0 = scmp.ge.s32.totalorder %s29_s19, 4  ;;  %s41_s20 = sadd.s32 1, %s707_s14 }
   0x9   : > { %p48_p1 = scmp.ne.s32.totalorder %s707_s14, %s703_s13  ;;  %p49_p2 = scmp.eq.s32.totalorder %s719_s17, 0 }
   0xa   : > { %s985_s19 = smov (%p30_p0, %s29_s19), 0  ;;  %p54_p4 = scmp.ne.s32.totalorder %s703_s13, %s699_s12 }
   0xb   : > { %p785_p3 = por %p49_p2, %p48_p1  ;;  %s37_s22 = ssub.s32 %s715_s16, %s985_s19 }
   0xc   : > { %p55_p5 = scmp.eq.s32.totalorder %s476_s18, 0  ;;  %p39_p6 = scmp.eq.s32.totalorder %s37_s22, 0 }
   0xd   : > { %p518_p8 = scmp.lt.s32.totalorder %s719_s17, 4  ;;  %s803_s25 = sand.u32 1, %s707_s14  }
   0xe   : > { %p794_p7 = por %p55_p5, %p54_p4  ;;  %s495_s26 = sshll.u32 %s715_s16, 10 }
   0xf   : > { %s800_s24 = scalar_select %p39_p6, %s707_s14, %s41_s20  }
  0x10   : > { %s972_s23 = scalar_select %p794_p7, 1, 0 }
  0x11   : > { %s479_s27 = sshll.u32 %s803_s25, 7  ;;  %s810_s30 = scalar_lea.hbm %s966_s0, %s495_s26 }
  0x12   : > { %s158_s4 = scalar_lea.vmem [#allocation3], %s479_s27  ;;  %p814_p9 = pnand %p518_p8, %p785_p3 }
  0x13   : > { %s168_s5 = sshll.u32 %s158_s4, 4  ;;  %s155_s7 = scalar_lea.sflag [#allocation4], %s803_s25  ;;  %s818_s5 = int_to_ptr.vmem [resolvable:$true] %s168_s5 }
  0x14   : > { %s575_s8 = scalar_lea.hbm %s810_s30, 2048  ;;  %p577_p12 = pneg %p814_p9 }
  0x15   : > { %p576_p11 = scmp.ne.s32.totalorder %s810_s30, %s575_s8  ;;  %s580_s11 = scalar_lea.hbm %s966_s0, 8192 }
  0x16   : > { %p581_p1 = scmp.lt.u32.totalorder %s810_s30, %s966_s0  ;;  %p582_p2 = scmp.lt.u32.totalorder %s580_s11, %s575_s8 }
  0x17   : > { %p578_p13 = pnand %p577_p12, %p576_p11  ;;  %p584_p4 = scmp.lt.u32.totalorder %s575_s8, %s810_s30 }
  0x18   : > { %p583_p3 = por %p582_p2, %p581_p1 }
  0x19   : > { %p579_p0 = pneg %p578_p13 }
  0x1a   : > { %p585_p5 = por %p584_p4, %p583_p3 }
  0x1c   : > { %p586_p6 = pnand %p585_p5, %p579_p0 }
  0x1e   : > { %589 = shalt.err (!%p586_p6)
}
  0x1f   : > { %s590_s21 = scalar_lea.vmem %s818_s5, 2048  ;;  %s721_s22 = smov [#allocation3]  }
  0x20   : > { %p591_p8 = scmp.ne.s32.totalorder %s818_s5, %s590_s21  ;;  %s595_s26 = sshll.u32 %s721_s22, 4  ;;  %s596_s26 = int_to_ptr.vmem [resolvable:$false] %s595_s26 }
  0x21   : > { %s597_s27 = scalar_lea.vmem %s596_s26, 4096  ;;  %p598_p10 = scmp.lt.s32.totalorder %s818_s5, %s596_s26 }
  0x22   : > { %p593_p11 = pnand %p591_p8, %p577_p12  ;;  %p599_p1 = scmp.lt.s32.totalorder %s597_s27, %s590_s21 }
  0x24   : > { %p594_p13 = pneg %p593_p11  ;;  %p600_p2 = por %p599_p1, %p598_p10 }
  0x26   : > { %p601_p3 = pnand %p600_p2, %p594_p13 }
  0x28   : > { %604 = shalt.err (!%p601_p3)
}
  0x29   : > { %s722_s28 = smov 4096   ;;  %s723_s29 = smov 1024  }
  0x2a   : > { %s724_s4 = smov 64   ;;  %p194_p0 = scmp.lt.s32.totalorder %s719_s17, 5 }
  0x2b   : > { %514 = dma.hbm_to_vmem [thread:$0]  (!%p814_p9), %s810_s30, 2048, %s818_s5, %s155_s7, %s722_s28, %s723_s29, %s724_s4  }
  0x2c   : > { %s482_s8 = sshll.u32 %s803_s25, 3  ;;  %s483_s9 = sshll.u32 %s715_s16, 7 }
  0x2d   : > { %p974_p10 = scmp.ge.s32.totalorder %s719_s17, 1  ;;  %s861_s20 = scalar_lea.hbm %s967_s1, %s483_s9 }
  0x2e   : > { %s182_s21 = scalar_lea.vmem [#allocation6], %s482_s8  ;;  %s179_s30 = scalar_lea.sflag [#allocation7], %s803_s25 }
  0x2f   : > { %p854_p4 = pnand %p974_p10, %p194_p0  ;;  %s189_s22 = sshll.u32 %s182_s21, 4  ;;  %s190_s22 = int_to_ptr.vmem [resolvable:$true] %s189_s22 }
  0x30   : > { %s605_s5 = scalar_lea.hbm %s861_s20, 128  ;;  %s610_s27 = scalar_lea.hbm %s967_s1, 512 }
  0x31   : > { %s975_s10 = scalar_select %p854_p4, 1, 0 }
  0x32   : > { %p606_p5 = scmp.ne.s32.totalorder %s861_s20, %s605_s5  ;;  %p611_p11 = scmp.lt.u32.totalorder %s861_s20, %s967_s1 }
  0x33   : > { %p612_p13 = scmp.lt.u32.totalorder %s610_s27, %s605_s5  ;;  %p614_p2 = scmp.lt.u32.totalorder %s605_s5, %s861_s20 }
  0x34   : > { %p608_p6 = pnand %p606_p5, %p577_p12 }
  0x35   : > { %p613_p1 = por %p612_p13, %p611_p11 }
  0x36   : > { %p609_p8 = pneg %p608_p6 }
  0x37   : > { %p615_p3 = por %p614_p2, %p613_p1 }
  0x39   : > { %p616_p0 = pnand %p615_p3, %p609_p8 }
  0x3b   : > { %619 = shalt.err (!%p616_p0)
}
  0x3c   : > { %s620_s25 = scalar_lea.vmem %s190_s22, 128  ;;  %s725_s4 = smov [#allocation6]  }
  0x3d   : > { %p621_p10 = scmp.ne.s32.totalorder %s190_s22, %s620_s25  ;;  %s625_s8 = sshll.u32 %s725_s4, 4  ;;  %s626_s8 = int_to_ptr.vmem [resolvable:$false] %s625_s8 }
  0x3e   : > { %s627_s9 = scalar_lea.vmem %s626_s8, 256  ;;  %p628_p7 = scmp.lt.s32.totalorder %s190_s22, %s626_s8 }
  0x3f   : > { %p623_p5 = pnand %p621_p10, %p577_p12  ;;  %p629_p4 = scmp.lt.s32.totalorder %s627_s9, %s620_s25 }
  0x41   : > { %p624_p6 = pneg %p623_p5  ;;  %p630_p11 = por %p629_p4, %p628_p7 }
  0x43   : > { %p631_p13 = pnand %p630_p11, %p624_p6 }
  0x45   : > { %634 = shalt.err (!%p631_p13)
}
  0x46   : > { %517 = dma.hbm_to_vmem [thread:$0]  (!%p814_p9), %s861_s20, 128, %s190_s22, %s179_s30  }
  0x47   : > { %p976_p8 = scmp.ne.s32.totalorder %s975_s10, 0 }
  0x48   : > { %s200_s11 = sand.u32 (!%p976_p8), 1, %s703_s13   ;;  %p977_p12 = scmp.ne.s32.totalorder (!%p976_p8), %s972_s23, 0 }
  0x49   : > { %198 = sbr.rel (%p976_p8) target bundleno = 505 (0x1f9), region = 32  ;;  %s485_s12 = sshll.u32 (!%p976_p8), %s200_s11, 7 }
  0x4a   : > { %s201_s21 = scalar_lea.sflag (!%p976_p8), [#allocation4], %s200_s11  ;;  %s886_s5 = scalar_lea.vmem (!%p976_p8), [#allocation3], %s485_s12 }
  0x50   : > { %686 = dma.done.wait (%p977_p12), %s201_s21, 2048  }
  0x51   : > { %688 = vsyncadd (%p977_p12), %s201_s21, 4294965248  ;;  %s486_s7 = sshll.u32 %s200_s11, 3  ;;  %s210_s6 = scalar_lea.sflag [#allocation7], %s200_s11 }
  0x52   : > { %s892_s26 = scalar_lea.vmem [#allocation6], %s486_s7 }
  0x53   : > { %690 = dma.done.wait (%p977_p12), %s210_s6, 128  }
  0x54   : > { %692 = vsyncadd (%p977_p12), %s210_s6, 4294967168  ;;  %p487_p7 = scmp.ne.s32.totalorder %s711_s15, 0 }
  0x55   : > { %v488_v0 = vld [vmem:[%s968_s2] ss:$0 sm:$0xff] (!%p487_p7) }
  0x56   : > { %240 = sbr.rel (%p487_p7) target bundleno = 93 (0x5d), region = 44  ;;  %248 = vst [vmem:[#allocation2] sm:$0x3] (!%p487_p7), %v488_v0 }
  0x5d PF: > { %v249_v1 = vld [vmem:[%s886_s5] sm:$0xff]  ;;  %v250_v2 = vld [vmem:[%s886_s5 + $0x8] sm:$0xff]  ;;  %v251_v3 = vld [vmem:[%s886_s5 + $0x10] sm:$0xff]  ;;  %v726_v32 = vmov 0.0   ;;  %vm727_vm0 = vmmov 0   ;;  %v287_v33 = vlaneseq  ;;  %vm297_vm1 = vcmask 1041409  }
  0x5e   : > { %v265_v4 = vadd.f32 %v250_v2, %v249_v1  ;;  %v252_v5 = vld [vmem:[%s886_s5 + $0x18] sm:$0xff]  ;;  %v257_v6 = vld [vmem:[%s886_s5 + $0x40] sm:$0xff]  ;;  %v258_v8 = vld [vmem:[%s886_s5 + $0x48] sm:$0xff]  ;;  %498 = vmatprep.subr.mxu0 %v726_v32  ;;  %500 = vmatprep.mubr.msk.f32.mxu0 %vm727_vm0, %v726_v32  ;;  %vm299_vm2 = vcmask 64512   ;;  %p490_p9 = scmp.ne.s32.totalorder %s711_s15, 3 }
  0x5f   : > { %v259_v9 = vld [vmem:[%s886_s5 + $0x50] sm:$0xff]  ;;  %v253_v10 = vld [vmem:[%s886_s5 + $0x20] sm:$0xff]  ;;  %v274_v11 = vadd.f32 %v258_v8, %v257_v6  ;;  %v260_v13 = vld [vmem:[%s886_s5 + $0x58] sm:$0xff]  ;;  %v288_v34 = vand.u32 127, %v287_v33  ;;  %v290_v35 = vshrl.u32 %v287_v33, 7 }
  0x60   : > { %v266_v7 = vadd.f32 %v265_v4, %v251_v3  ;;  %v254_v14 = vld [vmem:[%s886_s5 + $0x28] sm:$0xff]  ;;  %v261_v17 = vld [vmem:[%s886_s5 + $0x60] sm:$0xff]  ;;  %v255_v18 = vld [vmem:[%s886_s5 + $0x30] sm:$0xff] }
  0x61   : > { %v275_v15 = vadd.f32 %v274_v11, %v259_v9  ;;  %v262_v21 = vld [vmem:[%s886_s5 + $0x68] sm:$0xff]  ;;  %v256_v22 = vld [vmem:[%s886_s5 + $0x38] sm:$0xff]  ;;  %v263_v25 = vld [vmem:[%s886_s5 + $0x70] sm:$0xff]  ;;  %v291_v37 = vsub.s32 %v288_v34, %v290_v35 }
  0x62   : > { %v267_v12 = vadd.f32 %v266_v7, %v252_v5  ;;  %v264_v28 = vld [vmem:[%s886_s5 + $0x78] sm:$0xff]  ;;  %v284_v31 = vld [vmem:[%s892_s26] sm:$0xff] }
  0x63   : > { %v276_v19 = vadd.f32 %v275_v15, %v260_v13  ;;  %499 = vmatpush3.msra.mxu0 %v284_v31  ;;  %v283_v42 = vld [vmem:[#allocation2] sm:$0x3] }
  0x64   : > { %v268_v16 = vadd.f32 %v267_v12, %v253_v10 }
  0x65   : > { %v277_v23 = vadd.f32 %v276_v19, %v261_v17 }
  0x66   : > { %v269_v20 = vadd.f32 %v268_v16, %v254_v14 }
  0x67   : > { %v278_v26 = vadd.f32 %v277_v23, %v262_v21 }
  0x68   : > { %v270_v24 = vadd.f32 %v269_v20, %v255_v18 }
  0x69   : > { %v279_v29 = vadd.f32 %v278_v26, %v263_v25 }
  0x6a   : > { %v271_v27 = vadd.f32 %v270_v24, %v256_v22 }
  0x6b   : > { %v280_v30 = vadd.f32 %v279_v29, %v264_v28 }
  0x6c   : > { %272 = vadd.xlane.f32.xlu0 %v271_v27 }
  0x70   : > { %281 = vadd.xlane.f32.xlu0 %v280_v30 }
  0xf9   : > { %v273_v36 = vpop.xlane.xlu0 %272 }
  0xfa   : > { %v292_v39 = vrot.slane %v273_v36, %v291_v37 }
  0xfd   : > { %v282_v38 = vpop.xlane.xlu0 %281 }
  0xfe   : > { %v296_v40 = vrot.slane %v282_v38, %v291_v37 }
 0x100   : > { %v298_v41 = vsel %vm297_vm1, %v296_v40, %v292_v39 }
 0x101   : > { %501 = vmatmul.mubr.msk.f32.vlgmr.msra.gmra.mrb[0].mxu0 %vm299_vm2, %v298_v41 }
 0x1d1   : > { %377 = sbr.rel (%p490_p9) target bundleno = 480 (0x1e0), region = 48 }
 0x1d4   : > { %v368_v43 = vpop.f32.mrb[0].mxu0 }
 0x1d5   : > { %v372_v44 = vadd.f32 %v368_v43, %v283_v42  ;;  %v502_v45 = vpop.f32.mrb[1].mxu0 }
 0x1d7   : > { %373 = vst [vmem:[#allocation2] sm:$0x3] %v372_v44 }
 0x1de   : > { %v378_v46 = vld [vmem:[#allocation2] sm:$0x3] }
 0x1df   : > { %379 = vst [vmem:[#allocation8] sm:$0x3] %v378_v46 }
 0x1e0 PF: > { %p922_p4 = scmp.eq.s32.totalorder %s476_s18, 3  ;;  %s728_s22 = smov [#allocation8]  }
 0x1e1   : > { %s389_s30 = sshll.u32 %s728_s22, 4  ;;  %s390_s30 = int_to_ptr.vmem [resolvable:$true] %s389_s30 }
 0x1e2   : > { %s635_s27 = scalar_lea.vmem %s390_s30, 32  ;;  %p642_p0 = scmp.lt.s32.totalorder %s390_s30, %s390_s30 }
 0x1e3   : > { %p636_p1 = scmp.ne.s32.totalorder %s390_s30, %s635_s27  ;;  %p643_p10 = scmp.lt.s32.totalorder %s635_s27, %s635_s27 }
 0x1e5   : > { %p637_p2 = pnand %p636_p1, %p922_p4  ;;  %p644_p5 = por %p643_p10, %p642_p0 }
 0x1e7   : > { %p638_p3 = pneg %p637_p2 }
 0x1e9   : > { %p645_p6 = pnand %p644_p5, %p638_p3 }
 0x1eb   : > { %648 = shalt.err (!%p645_p6)
}
 0x1ec   : > { %s649_s18 = scalar_lea.hbm %s969_s3, 32 }
 0x1ed   : > { %p650_p11 = scmp.ne.s32.totalorder %s969_s3, %s649_s18  ;;  %p655_p12 = scmp.lt.u32.totalorder %s649_s18, %s969_s3 }
 0x1ef   : > { %p651_p13 = pnand %p650_p11, %p922_p4 }
 0x1f1   : > { %p652_p8 = pneg %p651_p13 }
 0x1f3   : > { %p657_p7 = pnand %p655_p12, %p652_p8 }
 0x1f5   : > { %660 = shalt.err (!%p657_p7)
}
 0x1f6   : > { %508 = dma.vmem_to_hbm [thread:$0]  (%p922_p4), %s390_s30, 32, %s969_s3, [#allocation5]  }
 0x1f7   : > { %694 = dma.done.wait (%p922_p4), [#allocation5], 32  }
 0x1f8   : > { %696 = vsyncadd (%p922_p4), [#allocation5], 4294967264 }
 0x1f9 PF: > { %s20_s17 = sadd.s32 1, %s719_s17   ;;  %s979_s12 = smov %s703_s13 }
 0x1fa   : > { %p17_p9 = scmp.ge.s32.totalorder %s20_s17, 6   ;;  %s980_s13 = smov %s707_s14 }
 0x1fb   : > { %s981_s14 = smov %s800_s24  ;;  %s982_s15 = smov %s715_s16 }
 0x1fc   : > { %s983_s16 = smov %s985_s19  ;;  %19 = sbr.rel (!%p17_p9) target bundleno = 7 (0x7), region = 91 }
 0x203   :  { %402 = vsyncpa [#allocation4], 1 }
 0x204   :  { %404 = vsyncpa [#allocation4 + $0x1], 1 }
 0x205   :  { %405 = vsyncpa [#allocation7], 1 }
 0x206   :  { %407 = vsyncpa [#allocation7 + $0x1], 1 }
 0x207   :  { %408 = vsyncpa [#allocation5], 1 }
 0x208   :  { %410 = vsyncpa [#allocation5 + $0x1], 1 }

</bundles_post_ra>
